<compile_context>
chip_gen: v7x
topology: tpu7x:2x2x1
jax: 0.10.0
libtpu: 0.0.40
codegen_flags: <defaults>
</compile_context>

<pallas_src>
import functools

import jax
import jax.numpy as jnp
from jax.experimental import pallas as pl
from jax.experimental.pallas import tpu as pltpu


def value_policy_kernel(state_ref, l1w_ref, l1b_ref, l2w_ref, l2b_ref, qtwT_ref, o_ref):
    """One batch tile of ValuePolicy.forward.

    state_ref : [TB, F]  (f32)
    l1w_ref   : [L, F, F] l1b_ref : [L, F]
    l2w_ref   : [L, F, F] l2b_ref : [L, F]      (weights may be bf16, biases f32)
    qtwT_ref  : [A, F]   (QTable weight, pre-transposed)
    o_ref     : [A, TB]  (softmax probs, lane-dense: TB = 128 lanes per store)
    """
    mm_dtype = l1w_ref.dtype
    x = state_ref[...].astype(jnp.float32)
    n_layers = l1w_ref.shape[0]

    # DeepResNet: static unroll over the small, fixed number of ResLayers.
    # Matmuls run on the MXU in mm_dtype (bf16) with f32 accumulation;
    # bias / ReLU / residual stay f32 on the VPU (v5e-safe).
    for l in range(n_layers):
        h = jnp.dot(x.astype(mm_dtype), l1w_ref[l],
                    preferred_element_type=jnp.float32)
        h = jnp.maximum(h + l1b_ref[l][None, :], 0.0)          # relu(l1(x))
        h = jnp.dot(h.astype(mm_dtype), l2w_ref[l],
                    preferred_element_type=jnp.float32)
        h = h + l2b_ref[l][None, :]                            # l2(...)
        x = jnp.maximum(h + x, 0.0)                            # relu(hidden + input)

    # Action values, produced directly in lane-dense [A, TB] layout:
    #   logits_t[a, b] = sum_f W^T[a, f] * hidden[b, f]
    # This is the rhs-transposed contraction the MXU handles natively (q @ k^T pattern).
    logits_t = jax.lax.dot_general(
        qtwT_ref[...], x.astype(mm_dtype),
        dimension_numbers=(((1,), (1,)), ((), ())),
        preferred_element_type=jnp.float32)                    # [A, TB]

    # Numerically stable softmax over the A actions (sublane axis).
    m = jnp.max(logits_t, axis=0, keepdims=True)               # [1, TB]
    e = jnp.exp(logits_t - m)
    s = jnp.sum(e, axis=0, keepdims=True)                      # [1, TB]
    o_ref[...] = (e / s).astype(o_ref.dtype)                   # [A, TB], unmasked vst


@functools.partial(jax.jit, static_argnames=("tile_b", "matmul_dtype"))
def value_policy(state, l1w, l1b, l2w, l2b, qt_w, *, tile_b=128,
                 matmul_dtype=jnp.bfloat16):
    """Returns softmax action probabilities [B, A] (the dist_class parameters)."""
    B, F = state.shape
    A = qt_w.shape[1]
    L = l1w.shape[0]

    # Pad the batch so any B works with a large (MXU-height) batch tile.
    num_tiles = pl.cdiv(B, tile_b)
    B_pad = num_tiles * tile_b
    if B_pad != B:
        state = jnp.pad(state, ((0, B_pad - B), (0, 0)))  # padded rows sliced off below

    # bf16 weights: half the DMA bytes + native MXU path on v6e/v7x. Biases stay f32.
    l1w = l1w.astype(matmul_dtype)
    l2w = l2w.astype(matmul_dtype)
    # The [F, A] table is tiny (F*A elements); pre-transposing it here lets the kernel
    # emit the lane-dense [A, TB] output with a native rhs-transposed MXU contraction.
    qt_wT = qt_w.T.astype(matmul_dtype)

    out_t = pl.pallas_call(
        value_policy_kernel,
        out_shape=jax.ShapeDtypeStruct((A, B_pad), jnp.float32),
        grid_spec=pltpu.PrefetchScalarGridSpec(
            num_scalar_prefetch=0,
            grid=(num_tiles,),
            in_specs=[
                pl.BlockSpec((tile_b, F), lambda i: (i, 0)),   # state tile
                pl.BlockSpec((L, F, F), lambda i: (0, 0, 0)),  # l1 weights (resident)
                pl.BlockSpec((L, F), lambda i: (0, 0)),        # l1 bias
                pl.BlockSpec((L, F, F), lambda i: (0, 0, 0)),  # l2 weights
                pl.BlockSpec((L, F), lambda i: (0, 0)),        # l2 bias
                pl.BlockSpec((A, F), lambda i: (0, 0)),        # QTable W^T
            ],
            # Lane-dense output blocks: [A, tile_b] with tile_b a multiple of 128.
            out_specs=pl.BlockSpec((A, tile_b), lambda i: (0, i)),
        ),
        compiler_params=pltpu.CompilerParams(
            dimension_semantics=("parallel",),
            vmem_limit_bytes=32 * 1024 * 1024,
        ),
    )(state, l1w, l1b, l2w, l2b, qt_wT)

    # [A, B_pad] -> [B, A]; drop the padded rows.
    return out_t[:, :B].T


def value_policy_reference(state, l1w, l1b, l2w, l2b, qt_w,
                           matmul_dtype=jnp.float32):
    """Pure-JAX mirror of the PyTorch ValuePolicy(SmartQTable).forward (spec-faithful:
    explicit B*A state replication, one-hot actions, full bilinear QTable contraction)."""
    B, F = state.shape
    A = qt_w.shape[1]
    c = lambda a: a.astype(matmul_dtype)

    states = jnp.broadcast_to(state[:, None, :], (B, A, F)).reshape(B * A, F)
    actions = jnp.broadcast_to(jnp.eye(A, dtype=state.dtype)[None],
                               (B, A, A)).reshape(B * A, A)

    x = states
    for l in range(l1w.shape[0]):
        h = jnp.maximum(jnp.dot(c(x), c(l1w[l]),
                                preferred_element_type=jnp.float32) + l1b[l], 0.0)
        h = jnp.dot(c(h), c(l2w[l]), preferred_element_type=jnp.float32) + l2b[l]
        x = jnp.maximum(h + x, 0.0)

    hid = c(x).astype(jnp.float32)
    w = c(qt_w).astype(jnp.float32)
    ctx = hid[:, :, None] * actions[:, None, :].astype(jnp.float32) * w[None, :, :]
    values = jnp.sum(ctx, axis=(1, 2)).reshape(B, A)
    return jax.nn.softmax(values, axis=1)


if __name__ == "__main__":
    # Small but realistic demo: B deliberately NOT a multiple of tile_b (exercises padding),
    # padded grid = 2 steps so both v7x TensorCores get work.
    B, F, A, L = 250, 32, 8, 2

    key = jax.random.PRNGKey(0)
    ks = jax.random.split(key, 6)

    state = jax.random.normal(ks[0], (B, F), dtype=jnp.float32)
    bound = 1.0 / jnp.sqrt(F)
    l1w = jax.random.uniform(ks[1], (L, F, F), jnp.float32, -bound, bound)
    l1b = jax.random.uniform(ks[2], (L, F), jnp.float32, -bound, bound)
    l2w = jax.random.uniform(ks[3], (L, F, F), jnp.float32, -bound, bound)
    l2b = jax.random.uniform(ks[4], (L, F), jnp.float32, -bound, bound)
    qt_w = jax.random.uniform(ks[5], (F, A), jnp.float32)  # torch.rand(features, actions)

    probs = value_policy(state, l1w, l1b, l2w, l2b, qt_w,
                         tile_b=128, matmul_dtype=jnp.bfloat16)
    probs = jax.block_until_ready(probs)
    assert probs.shape == (B, A)

    # Rows must be valid probability distributions.
    assert jnp.allclose(jnp.sum(probs, axis=1), 1.0, atol=1e-5)

    # Tight check vs. a reference that mirrors the kernel's bf16-matmul / f32-accumulate math.
    ref_bf16 = value_policy_reference(state, l1w, l1b, l2w, l2b, qt_w,
                                      matmul_dtype=jnp.bfloat16)
    err_bf16 = float(jnp.max(jnp.abs(probs - ref_bf16)))
    assert err_bf16 < 2e-3, f"mismatch vs bf16-mirrored reference: {err_bf16}"

    # Loose sanity check vs. the full-precision spec reference (bf16 MXU rounding only).
    ref_f32 = value_policy_reference(state, l1w, l1b, l2w, l2b, qt_w,
                                     matmul_dtype=jnp.float32)
    err_f32 = float(jnp.max(jnp.abs(probs - ref_f32)))
    assert err_f32 < 5e-2, f"mismatch vs f32 spec reference: {err_f32}"

    print("KERNEL_OK")
</pallas_src>

<mosaic_0001>
module attributes {stable_mosaic.version = 11 : i64} {
  func.func @value_policy_kernel(%arg0: i32, %arg1: memref<128x32xf32, #tpu.memory_space<vmem>>, %arg2: memref<2x32x32xbf16, #tpu.memory_space<vmem>>, %arg3: memref<2x32xf32, #tpu.memory_space<vmem>>, %arg4: memref<2x32x32xbf16, #tpu.memory_space<vmem>>, %arg5: memref<2x32xf32, #tpu.memory_space<vmem>>, %arg6: memref<8x32xbf16, #tpu.memory_space<vmem>>, %arg7: memref<8x128xf32, #tpu.memory_space<vmem>>) attributes {dimension_semantics = [#tpu.dimension_semantics<parallel>], iteration_bounds = array<i64: 2>, scalar_prefetch = 0 : i64, scratch_operands = 0 : i64, tpu.core_type = #tpu.core_type<tc>, window_params = [{transform_indices = @transform_0, window_bounds = array<i64: 128, 32>}, {pipeline_mode = #tpu.pipeline_mode<synchronous>, transform_indices = @transform_1, window_bounds = array<i64: 2, 32, 32>}, {pipeline_mode = #tpu.pipeline_mode<synchronous>, transform_indices = @transform_2, window_bounds = array<i64: 2, 32>}, {pipeline_mode = #tpu.pipeline_mode<synchronous>, transform_indices = @transform_3, window_bounds = array<i64: 2, 32, 32>}, {pipeline_mode = #tpu.pipeline_mode<synchronous>, transform_indices = @transform_4, window_bounds = array<i64: 2, 32>}, {pipeline_mode = #tpu.pipeline_mode<synchronous>, transform_indices = @transform_5, window_bounds = array<i64: 8, 32>}, {transform_indices = @transform_6, window_bounds = array<i64: 8, 128>}]} {
    %c0 = arith.constant 0 : index
    %c0_0 = arith.constant 0 : index
    %0 = vector.load %arg1[%c0, %c0_0] : memref<128x32xf32, #tpu.memory_space<vmem>>, vector<128x32xf32>
    %1 = arith.truncf %0 : vector<128x32xf32> to vector<128x32xbf16>
    %c0_1 = arith.constant 0 : index
    %c0_2 = arith.constant 0 : index
    %c0_3 = arith.constant 0 : index
    %2 = vector.load %arg2[%c0_1, %c0_2, %c0_3] : memref<2x32x32xbf16, #tpu.memory_space<vmem>>, vector<1x32x32xbf16>
    %3 = vector.shape_cast %2 : vector<1x32x32xbf16> to vector<32x32xbf16>
    %cst = arith.constant dense<0.000000e+00> : vector<128x32xf32>
    %4 = tpu.matmul %1, %3, %cst {dimension_numbers = #tpu.dot_dimension_numbers<[1], [0], [0], [1], [0, 0, 1, 1], [], []>} : vector<128x32xbf16>, vector<32x32xbf16>, vector<128x32xf32> -> vector<128x32xf32>
    %c0_4 = arith.constant 0 : index
    %c0_5 = arith.constant 0 : index
    %5 = vector.load %arg3[%c0_4, %c0_5] : memref<2x32xf32, #tpu.memory_space<vmem>>, vector<1x32xf32>
    %6 = vector.shape_cast %5 : vector<1x32xf32> to vector<32xf32>
    %7 = vector.shape_cast %6 : vector<32xf32> to vector<1x32xf32>
    %8 = vector.broadcast %7 : vector<1x32xf32> to vector<128x32xf32>
    %9 = arith.addf %4, %8 : vector<128x32xf32>
    %cst_6 = arith.constant 0.000000e+00 : f32
    %10 = vector.broadcast %cst_6 : f32 to vector<128x32xf32>
    %11 = arith.maximumf %9, %10 : vector<128x32xf32>
    %12 = arith.truncf %11 : vector<128x32xf32> to vector<128x32xbf16>
    %c0_7 = arith.constant 0 : index
    %c0_8 = arith.constant 0 : index
    %c0_9 = arith.constant 0 : index
    %13 = vector.load %arg4[%c0_7, %c0_8, %c0_9] : memref<2x32x32xbf16, #tpu.memory_space<vmem>>, vector<1x32x32xbf16>
    %14 = vector.shape_cast %13 : vector<1x32x32xbf16> to vector<32x32xbf16>
    %cst_10 = arith.constant dense<0.000000e+00> : vector<128x32xf32>
    %15 = tpu.matmul %12, %14, %cst_10 {dimension_numbers = #tpu.dot_dimension_numbers<[1], [0], [0], [1], [0, 0, 1, 1], [], []>} : vector<128x32xbf16>, vector<32x32xbf16>, vector<128x32xf32> -> vector<128x32xf32>
    %c0_11 = arith.constant 0 : index
    %c0_12 = arith.constant 0 : index
    %16 = vector.load %arg5[%c0_11, %c0_12] : memref<2x32xf32, #tpu.memory_space<vmem>>, vector<1x32xf32>
    %17 = vector.shape_cast %16 : vector<1x32xf32> to vector<32xf32>
    %18 = vector.shape_cast %17 : vector<32xf32> to vector<1x32xf32>
    %19 = vector.broadcast %18 : vector<1x32xf32> to vector<128x32xf32>
    %20 = arith.addf %15, %19 : vector<128x32xf32>
    %21 = arith.addf %20, %0 : vector<128x32xf32>
    %cst_13 = arith.constant 0.000000e+00 : f32
    %22 = vector.broadcast %cst_13 : f32 to vector<128x32xf32>
    %23 = arith.maximumf %21, %22 : vector<128x32xf32>
    %24 = arith.truncf %23 : vector<128x32xf32> to vector<128x32xbf16>
    %c1 = arith.constant 1 : index
    %c0_14 = arith.constant 0 : index
    %c0_15 = arith.constant 0 : index
    %25 = vector.load %arg2[%c1, %c0_14, %c0_15] : memref<2x32x32xbf16, #tpu.memory_space<vmem>>, vector<1x32x32xbf16>
    %26 = vector.shape_cast %25 : vector<1x32x32xbf16> to vector<32x32xbf16>
    %cst_16 = arith.constant dense<0.000000e+00> : vector<128x32xf32>
    %27 = tpu.matmul %24, %26, %cst_16 {dimension_numbers = #tpu.dot_dimension_numbers<[1], [0], [0], [1], [0, 0, 1, 1], [], []>} : vector<128x32xbf16>, vector<32x32xbf16>, vector<128x32xf32> -> vector<128x32xf32>
    %c1_17 = arith.constant 1 : index
    %c0_18 = arith.constant 0 : index
    %28 = vector.load %arg3[%c1_17, %c0_18] : memref<2x32xf32, #tpu.memory_space<vmem>>, vector<1x32xf32>
    %29 = vector.shape_cast %28 : vector<1x32xf32> to vector<32xf32>
    %30 = vector.shape_cast %29 : vector<32xf32> to vector<1x32xf32>
    %31 = vector.broadcast %30 : vector<1x32xf32> to vector<128x32xf32>
    %32 = arith.addf %27, %31 : vector<128x32xf32>
    %cst_19 = arith.constant 0.000000e+00 : f32
    %33 = vector.broadcast %cst_19 : f32 to vector<128x32xf32>
    %34 = arith.maximumf %32, %33 : vector<128x32xf32>
    %35 = arith.truncf %34 : vector<128x32xf32> to vector<128x32xbf16>
    %c1_20 = arith.constant 1 : index
    %c0_21 = arith.constant 0 : index
    %c0_22 = arith.constant 0 : index
    %36 = vector.load %arg4[%c1_20, %c0_21, %c0_22] : memref<2x32x32xbf16, #tpu.memory_space<vmem>>, vector<1x32x32xbf16>
    %37 = vector.shape_cast %36 : vector<1x32x32xbf16> to vector<32x32xbf16>
    %cst_23 = arith.constant dense<0.000000e+00> : vector<128x32xf32>
    %38 = tpu.matmul %35, %37, %cst_23 {dimension_numbers = #tpu.dot_dimension_numbers<[1], [0], [0], [1], [0, 0, 1, 1], [], []>} : vector<128x32xbf16>, vector<32x32xbf16>, vector<128x32xf32> -> vector<128x32xf32>
    %c1_24 = arith.constant 1 : index
    %c0_25 = arith.constant 0 : index
    %39 = vector.load %arg5[%c1_24, %c0_25] : memref<2x32xf32, #tpu.memory_space<vmem>>, vector<1x32xf32>
    %40 = vector.shape_cast %39 : vector<1x32xf32> to vector<32xf32>
    %41 = vector.shape_cast %40 : vector<32xf32> to vector<1x32xf32>
    %42 = vector.broadcast %41 : vector<1x32xf32> to vector<128x32xf32>
    %43 = arith.addf %38, %42 : vector<128x32xf32>
    %44 = arith.addf %43, %23 : vector<128x32xf32>
    %cst_26 = arith.constant 0.000000e+00 : f32
    %45 = vector.broadcast %cst_26 : f32 to vector<128x32xf32>
    %46 = arith.maximumf %44, %45 : vector<128x32xf32>
    %c0_27 = arith.constant 0 : index
    %c0_28 = arith.constant 0 : index
    %47 = vector.load %arg6[%c0_27, %c0_28] : memref<8x32xbf16, #tpu.memory_space<vmem>>, vector<8x32xbf16>
    %48 = arith.truncf %46 : vector<128x32xf32> to vector<128x32xbf16>
    %cst_29 = arith.constant dense<0.000000e+00> : vector<8x128xf32>
    %49 = tpu.matmul %47, %48, %cst_29 {dimension_numbers = #tpu.dot_dimension_numbers<[1], [1], [0], [0], [0, 0, 1, 0], [], []>} : vector<8x32xbf16>, vector<128x32xbf16>, vector<8x128xf32> -> vector<8x128xf32>
    %cst_30 = arith.constant dense<0xFF800000> : vector<128xf32>
    %50 = vector.multi_reduction <maximumf>, %49, %cst_30 [0] : vector<8x128xf32> to vector<128xf32>
    %51 = vector.shape_cast %50 : vector<128xf32> to vector<1x128xf32>
    %52 = vector.broadcast %51 : vector<1x128xf32> to vector<8x128xf32>
    %53 = arith.subf %49, %52 : vector<8x128xf32>
    %54 = math.exp %53 : vector<8x128xf32>
    %cst_31 = arith.constant dense<0.000000e+00> : vector<128xf32>
    %55 = vector.multi_reduction <add>, %54, %cst_31 [0] : vector<8x128xf32> to vector<128xf32>
    %56 = vector.shape_cast %55 : vector<128xf32> to vector<1x128xf32>
    %57 = vector.broadcast %56 : vector<1x128xf32> to vector<8x128xf32>
    %58 = arith.divf %54, %57 : vector<8x128xf32>
    %c0_32 = arith.constant 0 : index
    %c0_33 = arith.constant 0 : index
    %59 = vector.load %arg7[%c0_32, %c0_33] : memref<8x128xf32, #tpu.memory_space<vmem>>, vector<8x128xf32>
    tpu.vector_store %arg7[%c0_32, %c0_33], %58 {strides = array<i32>} : memref<8x128xf32, #tpu.memory_space<vmem>>, vector<8x128xf32>,
    return
  }
  func.func @transform_0(%arg0: i32) -> (i32, i32) {
    %c0_i32 = arith.constant 0 : i32
    %c0_i32_0 = arith.constant 0 : i32
    return %arg0, %c0_i32 : i32, i32
  }
  func.func @transform_1(%arg0: i32) -> (i32, i32, i32) {
    %c0_i32 = arith.constant 0 : i32
    %c0_i32_0 = arith.constant 0 : i32
    %c0_i32_1 = arith.constant 0 : i32
    %c0_i32_2 = arith.constant 0 : i32
    return %c0_i32, %c0_i32_0, %c0_i32_1 : i32, i32, i32
  }
  func.func @transform_2(%arg0: i32) -> (i32, i32) {
    %c0_i32 = arith.constant 0 : i32
    %c0_i32_0 = arith.constant 0 : i32
    %c0_i32_1 = arith.constant 0 : i32
    return %c0_i32, %c0_i32_0 : i32, i32
  }
  func.func @transform_3(%arg0: i32) -> (i32, i32, i32) {
    %c0_i32 = arith.constant 0 : i32
    %c0_i32_0 = arith.constant 0 : i32
    %c0_i32_1 = arith.constant 0 : i32
    %c0_i32_2 = arith.constant 0 : i32
    return %c0_i32, %c0_i32_0, %c0_i32_1 : i32, i32, i32
  }
  func.func @transform_4(%arg0: i32) -> (i32, i32) {
    %c0_i32 = arith.constant 0 : i32
    %c0_i32_0 = arith.constant 0 : i32
    %c0_i32_1 = arith.constant 0 : i32
    return %c0_i32, %c0_i32_0 : i32, i32
  }
  func.func @transform_5(%arg0: i32) -> (i32, i32) {
    %c0_i32 = arith.constant 0 : i32
    %c0_i32_0 = arith.constant 0 : i32
    %c0_i32_1 = arith.constant 0 : i32
    return %c0_i32, %c0_i32_0 : i32, i32
  }
  func.func @transform_6(%arg0: i32) -> (i32, i32) {
    %c0_i32 = arith.constant 0 : i32
    %c0_i32_0 = arith.constant 0 : i32
    return %c0_i32, %arg0 : i32, i32
  }
}

</mosaic_0001>

<bundles_post_ra>
// kernel: value_policy.1
= control target key start
LH: loop header
LB: loop body
LE: loop exit
PB: predicated region body
PF: predicated region fallthrough
CT: control target
= control target key end

     0   :  { %s1398_s21 = smov 0   ;;  %s1739_s0 = inlined_call_operand.vmem [shape: f32[256,32], index: 0, kind: input, shape index: {}]   ;;  %s1740_s1 = inlined_call_operand.vmem [shape: bf16[2,32,32], index: 1, kind: input, shape index: {}]   ;;  %s1741_s2 = inlined_call_operand.vmem [shape: f32[2,32], index: 2, kind: input, shape index: {}]   ;;  %s1742_s3 = inlined_call_operand.vmem [shape: bf16[2,32,32], index: 3, kind: input, shape index: {}]   ;;  %s1743_s4 = inlined_call_operand.vmem [shape: f32[2,32], index: 4, kind: input, shape index: {}]   ;;  %s1744_s5 = inlined_call_operand.vmem [shape: bf16[8,32], index: 5, kind: input, shape index: {}]   ;;  %s1745_s6 = inlined_call_operand.vmem [shape: f32[8,256], index: 6, kind: output, shape index: {}]  }
   0x1 LB: > { %s1404_s22 = sadd.s32 4294967295, %s1359_s21   ;;  %p1119_p0 = scmp.ge.s32.totalorder %s1359_s21, 1  ;;  %s1359_s21 = sphi %s1398_s21, %s16_s21  }
   0x2   : > { %p213_p1 = scmp.lt.s32.totalorder %s1359_s21, 3 }
   0x4   : > { %p214_p2 = pnand %p1119_p0, %p213_p1 }
   0x5   : > { %v1341_v0 = vld [vmem:[%s1740_s1] sm:$0xff] (!%p214_p2)   ;;  %s1120_s25 = sshll.u32 (!%p214_p2), %s1404_s22, 4  ;;  %v1342_v1 = vld [vmem:[%s1740_s1 + $0x8] sm:$0xff] (!%p214_p2)   ;;  %vm298_vm0 = vcmask (!%p214_p2), 261120   ;;  %vm1362_vm1 = vmmov (!%p214_p2), 0   ;;  %p248_p4 = scmp.lt.s32.totalorder (!%p214_p2), %s1404_s22, 1 }
   0x6   : > { %217 = sbr.rel (%p214_p2) target bundleno = 1240 (0x4d8), region = 44  ;;  %p243_p3 = scmp.lt.s32.totalorder (!%p214_p2), %s1120_s25, 31  ;;  %1227 = vmatprep.subr.bf16.mxu0 (!%p214_p2), %v1341_v0  ;;  %1327 = vmatprep.subr.bf16.mxu1 (!%p214_p2), %v1341_v0  ;;  %v1343_v2 = vld [vmem:[%s1742_s3] sm:$0xff] (!%p214_p2)   ;;  %v1344_v17 = vld [vmem:[%s1742_s3 + $0x8] sm:$0xff] (!%p214_p2)  }
   0x7   : > { %1228 = vmatpush3.bf16.msra.mxu0 (!%p214_p2), %v1341_v0  ;;  %1329 = vmatpush3.bf16.msra.mxu1 (!%p214_p2), %v1341_v0  ;;  %v1123_v28 = vld [vmem:[%s1741_s2] ss:$0 sm:$0xff] (!%p214_p2) }
   0x8   : > { %1229 = vmatprep.subr.bf16.mxu0 (!%p214_p2), %v1342_v1  ;;  %1328 = vmatprep.subr.bf16.mxu1 (!%p214_p2), %v1342_v1 }
   0xb   : > { %1230 = vmatpush3.bf16.msra.mxu0 (!%p214_p2), %v1342_v1  ;;  %1330 = vmatpush3.bf16.msra.mxu1 (!%p214_p2), %v1342_v1 }
   0xc   : > { %1247 = vmatprep.subr.bf16.mxu1 (!%p214_p2), %v1343_v2 }
   0xd   : > { %s1747_s25 = smov (!%p243_p3, %s1120_s25), 31  ;;  %s1749_s22 = smov (!%p248_p4, %s1404_s22), 1 }
   0xe   : > { %s1121_s30 = sshll.u32 %s1747_s25, 3  ;;  %s1122_s8 = sshll.u32 %s1749_s22, 3 }
   0xf   : > { %s1421_s9 = scalar_lea.vmem %s1739_s0, %s1121_s30  ;;  %s251_s11 = scalar_lea.vmem %s1745_s6, %s1122_s8 }
  0x10   : > { %v1424_v3 = vld [vmem:[%s1421_s9] sm:$0xff]  ;;  %v1427_v4 = vld [vmem:[%s1421_s9 + $0x8] sm:$0xff]  ;;  %v1430_v5 = vld [vmem:[%s1421_s9 + $0x10] sm:$0xff] }
  0x11   : > { %v269_v6 = vpack.c.bf16 %v1427_v4, %v1424_v3  ;;  %v1435_v7 = vld [vmem:[%s1421_s9 + $0x18] sm:$0xff]  ;;  %v1438_v8 = vld [vmem:[%s1421_s9 + $0x20] sm:$0xff]  ;;  %v1441_v9 = vld [vmem:[%s1421_s9 + $0x28] sm:$0xff] }
  0x12   : > { %v270_v10 = vpack.c.bf16 %v1435_v7, %v1430_v5  ;;  %v271_v11 = vpack.c.bf16 %v1441_v9, %v1438_v8  ;;  %v1448_v12 = vld [vmem:[%s1421_s9 + $0x30] sm:$0xff]  ;;  %v1451_v13 = vld [vmem:[%s1421_s9 + $0x38] sm:$0xff]  ;;  %v1454_v14 = vld [vmem:[%s1421_s9 + $0x40] sm:$0xff] }
  0x13   : > { %1231 = vmatprep.mubr.msk.bf16.mxu0 %vm298_vm0, %v269_v6  ;;  %v272_v15 = vpack.c.bf16 %v1451_v13, %v1448_v12  ;;  %v1460_v16 = vld [vmem:[%s1421_s9 + $0x48] sm:$0xff]  ;;  %v1472_v19 = vld [vmem:[%s1421_s9 + $0x50] sm:$0xff]  ;;  %v1475_v20 = vld [vmem:[%s1421_s9 + $0x58] sm:$0xff] }
  0x14   : > { %1232 = vmatmul.mubr.msk.bf16.vlgmr.msra.gmra.mrb[0].mxu0 %vm298_vm0, %v270_v10  ;;  %1235 = vmatprep.mubr.msk.bf16.mxu1 %vm298_vm0, %v271_v11  ;;  %v273_v18 = vpack.c.bf16 %v1460_v16, %v1454_v14  ;;  %v1478_v21 = vld [vmem:[%s1421_s9 + $0x60] sm:$0xff]  ;;  %v1481_v22 = vld [vmem:[%s1421_s9 + $0x68] sm:$0xff]  ;;  %v274_v23 = vpack.c.bf16 %v1475_v20, %v1472_v19  ;;  %v1490_v25 = vld [vmem:[%s1421_s9 + $0x70] sm:$0xff] }
  0x15   : > { %1236 = vmatmul.mubr.msk.bf16.vlgmr.msra.gmra.mrb[0].mxu1 %vm298_vm0, %v272_v15  ;;  %v275_v24 = vpack.c.bf16 %v1481_v22, %v1478_v21  ;;  %v1493_v26 = vld [vmem:[%s1421_s9 + $0x78] sm:$0xff] }
  0x16   : > { %1239 = vmatprep.mubr.msk.bf16.mxu1 %vm298_vm0, %v273_v18  ;;  %1248 = vmatpush3.bf16.msra.mxu1 %v1343_v2  ;;  %v276_v27 = vpack.c.bf16 %v1493_v26, %v1490_v25 }
  0x17   : > { %1249 = vmatprep.subr.bf16.mxu1 %v1344_v17 }
  0x1a   : > { %1250 = vmatpush3.bf16.msra.mxu1 %v1344_v17 }
  0x1d   : > { %1240 = vmatmul.mubr.msk.bf16.gmra.mrb[4].mxu1 %vm298_vm0, %v274_v23 }
  0x1e   : > { %1243 = vmatprep.mubr.msk.bf16.mxu1 %vm298_vm0, %v275_v24 }
  0x25   : > { %1244 = vmatmul.mubr.msk.bf16.gmra.mrb[8].mxu1 %vm298_vm0, %v276_v27 }
  0xe7   : > { %v1233_v29 = vpop.f32.mrb[0].mxu0 }
  0xe8   : > { %v366_v30 = vadd.f32 %v1233_v29, %v1123_v28  ;;  %v357_v31 = vpop.f32.mrb[1].mxu0  ;;  %v1237_v32 = vpop.f32.mrb[0].mxu1 }
  0xe9   : > { %v358_v33 = vadd.f32 %v1123_v28, %v357_v31  ;;  %v1234_v34 = vpop.f32.mrb[2].mxu0  ;;  %v382_v35 = vadd.f32 %v1237_v32, %v1123_v28  ;;  %v373_v36 = vpop.f32.mrb[1].mxu1 }
  0xea   : > { %v369_v37 = vadd.f32 %v1234_v34, %v1123_v28  ;;  %v360_v38 = vpop.f32.mrb[3].mxu0  ;;  %v374_v39 = vadd.f32 %v1123_v28, %v373_v36  ;;  %v1238_v40 = vpop.f32.mrb[2].mxu1  ;;  %v422_v45 = vmax.f32 %v366_v30, 0.0 }
  0xeb   : > { %v361_v41 = vadd.f32 %v1123_v28, %v360_v38  ;;  %v426_v42 = vmax.f32 %v382_v35, 0.0  ;;  %v385_v43 = vadd.f32 %v1238_v40, %v1123_v28  ;;  %v376_v44 = vpop.f32.mrb[3].mxu1  ;;  %v420_v49 = vmax.f32 %v358_v33, 0.0  ;;  %v1345_v38 = vld [vmem:[%s1740_s1 + $0x10] sm:$0xff]   ;;  %v1348_v40 = vld [vmem:[%s1742_s3 + $0x18] sm:$0xff]  }
  0xec   : > { %v423_v46 = vmax.f32 %v369_v37, 0.0  ;;  %v424_v47 = vmax.f32 %v374_v39, 0.0  ;;  %v377_v48 = vadd.f32 %v1123_v28, %v376_v44  ;;  %1267 = vmatprep.subr.bf16.mxu0 %v1345_v38  ;;  %v1347_v39 = vld [vmem:[%s1742_s3 + $0x10] sm:$0xff]  }
  0xed   : > { %v421_v50 = vmax.f32 %v361_v41, 0.0  ;;  %v427_v51 = vmax.f32 %v385_v43, 0.0  ;;  %1268 = vmatpush3.bf16.msra.mxu0 %v1345_v38  ;;  %1287 = vmatprep.subr.bf16.mxu1 %v1347_v39  ;;  %v1524_v41 = vld [vmem:[%s1743_s4] ss:$0 sm:$0xff] }
  0xee   : > { %v437_v52 = vpack.c.bf16 %v423_v46, %v422_v45  ;;  %v425_v53 = vmax.f32 %v377_v48, 0.0 }
  0xef   : > { %v436_v54 = vpack.c.bf16 %v421_v50, %v420_v49  ;;  %v439_v55 = vpack.c.bf16 %v427_v51, %v426_v42 }
  0xf0   : > { %v438_v56 = vpack.c.bf16 %v425_v53, %v424_v47  ;;  %v1241_v57 = vpop.f32.mrb[4].mxu1 }
  0xf1   : > { %1251 = vmatprep.mubr.msk.bf16.mxu1 %vm298_vm0, %v436_v54  ;;  %v398_v58 = vadd.f32 %v1241_v57, %v1123_v28  ;;  %v389_v59 = vpop.f32.mrb[5].mxu1 }
  0xf2   : > { %1252 = vmatmul.mubr.msk.bf16.vlgmr.msra.gmra.mrb[12].mxu1 %vm298_vm0, %v437_v52  ;;  %v390_v60 = vadd.f32 %v1123_v28, %v389_v59  ;;  %v1242_v61 = vpop.f32.mrb[6].mxu1 }
  0xf3   : > { %v430_v62 = vmax.f32 %v398_v58, 0.0  ;;  %v401_v63 = vadd.f32 %v1242_v61, %v1123_v28  ;;  %1255 = vmatprep.mubr.msk.bf16.mxu1 %vm298_vm0, %v438_v56  ;;  %v392_v0 = vpop.f32.mrb[7].mxu1  ;;  %1288 = vmatpush3.bf16.msra.mxu1 %v1347_v39 }
  0xf4   : > { %v428_v1 = vmax.f32 %v390_v60, 0.0  ;;  %v393_v2 = vadd.f32 %v1123_v28, %v392_v0  ;;  %1289 = vmatprep.subr.bf16.mxu1 %v1348_v40 }
  0xf5   : > { %v431_v6 = vmax.f32 %v401_v63, 0.0 }
  0xf6   : > { %v429_v10 = vmax.f32 %v393_v2, 0.0 }
  0xf7   : > { %v441_v11 = vpack.c.bf16 %v431_v6, %v430_v62  ;;  %1290 = vmatpush3.bf16.msra.mxu1 %v1348_v40 }
  0xf8   : > { %v440_v15 = vpack.c.bf16 %v429_v10, %v428_v1  ;;  %v1245_v17 = vpop.f32.mrb[8].mxu1 }
  0xf9   : > { %v414_v18 = vadd.f32 %v1245_v17, %v1123_v28  ;;  %v405_v23 = vpop.f32.mrb[9].mxu1 }
  0xfa   : > { %1256 = vmatmul.mubr.msk.bf16.gmra.mrb[16].mxu1 %vm298_vm0, %v439_v55  ;;  %v406_v24 = vadd.f32 %v1123_v28, %v405_v23  ;;  %v1246_v27 = vpop.f32.mrb[10].mxu1 }
  0xfb   : > { %v434_v29 = vmax.f32 %v414_v18, 0.0  ;;  %v417_v30 = vadd.f32 %v1246_v27, %v1123_v28  ;;  %1259 = vmatprep.mubr.msk.bf16.mxu1 %vm298_vm0, %v440_v15  ;;  %v408_v31 = vpop.f32.mrb[11].mxu1 }
  0xfc   : > { %v432_v32 = vmax.f32 %v406_v24, 0.0  ;;  %v409_v33 = vadd.f32 %v1123_v28, %v408_v31  ;;  %v1346_v28 = vld [vmem:[%s1740_s1 + $0x18] sm:$0xff]  }
  0xfd   : > { %v435_v34 = vmax.f32 %v417_v30, 0.0  ;;  %1269 = vmatprep.subr.bf16.mxu0 %v1346_v28 }
  0xfe   : > { %v433_v35 = vmax.f32 %v409_v33, 0.0  ;;  %1270 = vmatpush3.bf16.msra.mxu0 %v1346_v28 }
  0xff   : > { %v443_v36 = vpack.c.bf16 %v435_v34, %v434_v29 }
 0x100   : > { %v442_v37 = vpack.c.bf16 %v433_v35, %v432_v32 }
 0x102   : > { %1260 = vmatmul.mubr.msk.bf16.gmra.mrb[20].mxu1 %vm298_vm0, %v441_v11 }
 0x103   : > { %1263 = vmatprep.mubr.msk.bf16.mxu1 %vm298_vm0, %v442_v37 }
 0x10a   : > { %1264 = vmatmul.mubr.msk.bf16.gmra.mrb[24].mxu1 %vm298_vm0, %v443_v36 }
 0x1c5   : > { %v1253_v42 = vpop.f32.mrb[12].mxu1 }
 0x1c6   : > { %v532_v43 = vadd.f32 %v1253_v42, %v1524_v41  ;;  %v523_v44 = vpop.f32.mrb[13].mxu1 }
 0x1c7   : > { %v524_v45 = vadd.f32 %v1524_v41, %v523_v44  ;;  %v1254_v46 = vpop.f32.mrb[14].mxu1 }
 0x1c8   : > { %v535_v47 = vadd.f32 %v1254_v46, %v1524_v41  ;;  %v526_v48 = vpop.f32.mrb[15].mxu1  ;;  %v1534_v51 = vadd.f32 %v532_v43, %v1430_v5 }
 0x1c9   : > { %v1530_v49 = vadd.f32 %v524_v45, %v1424_v3  ;;  %v527_v50 = vadd.f32 %v1524_v41, %v526_v48 }
 0x1ca   : > { %v1537_v52 = vadd.f32 %v535_v47, %v1435_v7  ;;  %v604_v3 = vmax.f32 %v1534_v51, 0.0 }
 0x1cb   : > { %v1540_v53 = vadd.f32 %v527_v50, %v1427_v4  ;;  %v602_v55 = vmax.f32 %v1530_v49, 0.0 }
 0x1cc   : > { %v605_v54 = vmax.f32 %v1537_v52, 0.0 }
 0x1cd   : > { %v603_v56 = vmax.f32 %v1540_v53, 0.0  ;;  %v1257_v57 = vpop.f32.mrb[16].mxu1 }
 0x1ce   : > { %v548_v58 = vadd.f32 %v1257_v57, %v1524_v41  ;;  %v539_v59 = vpop.f32.mrb[17].mxu1  ;;  %v619_v60 = vpack.c.bf16 %v605_v54, %v604_v3 }
 0x1cf   : > { %v618_v5 = vpack.c.bf16 %v603_v56, %v602_v55  ;;  %v540_v4 = vadd.f32 %v1524_v41, %v539_v59  ;;  %v1258_v7 = vpop.f32.mrb[18].mxu1 }
 0x1d0   : > { %v1557_v61 = vadd.f32 %v548_v58, %v1448_v12  ;;  %v551_v62 = vadd.f32 %v1258_v7, %v1524_v41  ;;  %v542_v63 = vpop.f32.mrb[19].mxu1 }
 0x1d1   : > { %v1561_v0 = vadd.f32 %v540_v4, %v1438_v8  ;;  %v543_v1 = vadd.f32 %v1524_v41, %v542_v63  ;;  %1271 = vmatprep.mubr.msk.bf16.mxu0 %vm298_vm0, %v618_v5 }
 0x1d2   : > { %v608_v2 = vmax.f32 %v1557_v61, 0.0  ;;  %v1567_v6 = vadd.f32 %v551_v62, %v1451_v13  ;;  %1272 = vmatmul.mubr.msk.bf16.vlgmr.msra.gmra.mrb[4].mxu0 %vm298_vm0, %v619_v60 }
 0x1d3   : > { %v606_v12 = vmax.f32 %v1561_v0, 0.0  ;;  %v1572_v10 = vadd.f32 %v543_v1, %v1441_v9 }
 0x1d4   : > { %v609_v11 = vmax.f32 %v1567_v6, 0.0 }
 0x1d5   : > { %v607_v8 = vmax.f32 %v1572_v10, 0.0  ;;  %v1261_v15 = vpop.f32.mrb[20].mxu1 }
 0x1d6   : > { %v621_v17 = vpack.c.bf16 %v609_v11, %v608_v2  ;;  %v564_v13 = vadd.f32 %v1261_v15, %v1524_v41  ;;  %v555_v18 = vpop.f32.mrb[21].mxu1 }
 0x1d7   : > { %v620_v23 = vpack.c.bf16 %v607_v8, %v606_v12  ;;  %v556_v9 = vadd.f32 %v1524_v41, %v555_v18  ;;  %v1262_v24 = vpop.f32.mrb[22].mxu1 }
 0x1d8   : > { %v1587_v27 = vadd.f32 %v564_v13, %v1472_v19  ;;  %v567_v29 = vadd.f32 %v1262_v24, %v1524_v41  ;;  %v558_v30 = vpop.f32.mrb[23].mxu1 }
 0x1d9   : > { %v1591_v31 = vadd.f32 %v556_v9, %v1454_v14  ;;  %v559_v32 = vadd.f32 %v1524_v41, %v558_v30  ;;  %1275 = vmatprep.mubr.msk.bf16.mxu0 %vm298_vm0, %v620_v23 }
 0x1da   : > { %v612_v33 = vmax.f32 %v1587_v27, 0.0  ;;  %v1597_v34 = vadd.f32 %v567_v29, %v1475_v20  ;;  %1276 = vmatmul.mubr.msk.bf16.gmra.mrb[8].mxu0 %vm298_vm0, %v621_v17 }
 0x1db   : > { %v610_v19 = vmax.f32 %v1591_v31, 0.0  ;;  %v1602_v35 = vadd.f32 %v559_v32, %v1460_v16 }
 0x1dc   : > { %v613_v36 = vmax.f32 %v1597_v34, 0.0 }
 0x1dd   : > { %v611_v14 = vmax.f32 %v1602_v35, 0.0  ;;  %v1265_v37 = vpop.f32.mrb[24].mxu1 }
 0x1de   : > { %v623_v38 = vpack.c.bf16 %v613_v36, %v612_v33  ;;  %v580_v20 = vadd.f32 %v1265_v37, %v1524_v41  ;;  %v571_v28 = vpop.f32.mrb[25].mxu1 }
 0x1df   : > { %v622_v39 = vpack.c.bf16 %v611_v14, %v610_v19  ;;  %v572_v16 = vadd.f32 %v1524_v41, %v571_v28  ;;  %v1266_v40 = vpop.f32.mrb[26].mxu1 }
 0x1e0   : > { %v1617_v42 = vadd.f32 %v580_v20, %v1490_v25  ;;  %v583_v43 = vadd.f32 %v1266_v40, %v1524_v41  ;;  %v574_v44 = vpop.f32.mrb[27].mxu1 }
 0x1e1   : > { %v1621_v45 = vadd.f32 %v572_v16, %v1478_v21  ;;  %v575_v46 = vadd.f32 %v1524_v41, %v574_v44  ;;  %1279 = vmatprep.mubr.msk.bf16.mxu0 %vm298_vm0, %v622_v39 }
 0x1e2   : > { %v616_v47 = vmax.f32 %v1617_v42, 0.0  ;;  %v1627_v48 = vadd.f32 %v583_v43, %v1493_v26  ;;  %1280 = vmatmul.mubr.msk.bf16.gmra.mrb[12].mxu0 %vm298_vm0, %v623_v38 }
 0x1e3   : > { %v614_v25 = vmax.f32 %v1621_v45, 0.0  ;;  %v1632_v50 = vadd.f32 %v575_v46, %v1481_v22  ;;  %v1149_v22 = vld [vmem:[%s1741_s2 + $0x1] ss:$0 sm:$0xff] }
 0x1e4   : > { %v617_v57 = vmax.f32 %v1627_v48, 0.0 }
 0x1e5   : > { %v615_v21 = vmax.f32 %v1632_v50, 0.0 }
 0x1e6   : > { %v625_v41 = vpack.c.bf16 %v617_v57, %v616_v47 }
 0x1e7   : > { %v624_v26 = vpack.c.bf16 %v615_v21, %v614_v25 }
 0x1e9   : > { %1283 = vmatprep.mubr.msk.bf16.mxu0 %vm298_vm0, %v624_v26 }
 0x1ea   : > { %1284 = vmatmul.mubr.msk.bf16.gmra.mrb[16].mxu0 %vm298_vm0, %v625_v41 }
 0x2a5   : > { %v1273_v58 = vpop.f32.mrb[4].mxu0 }
 0x2a6   : > { %v715_v59 = vadd.f32 %v1273_v58, %v1149_v22  ;;  %v706_v5 = vpop.f32.mrb[5].mxu0 }
 0x2a7   : > { %v707_v4 = vadd.f32 %v1149_v22, %v706_v5  ;;  %v1274_v7 = vpop.f32.mrb[6].mxu0 }
 0x2a8   : > { %v718_v60 = vadd.f32 %v1274_v7, %v1149_v22  ;;  %v709_v62 = vpop.f32.mrb[7].mxu0  ;;  %v771_v1 = vmax.f32 %v715_v59, 0.0 }
 0x2a9   : > { %v710_v63 = vadd.f32 %v1149_v22, %v709_v62  ;;  %v769_v17 = vmax.f32 %v707_v4, 0.0 }
 0x2aa   : > { %v772_v15 = vmax.f32 %v718_v60, 0.0 }
 0x2ab   : > { %v770_v13 = vmax.f32 %v710_v63, 0.0 }
 0x2ac   : > { %v786_v18 = vpack.c.bf16 %v772_v15, %v771_v1 }
 0x2ad   : > { %v785_v23 = vpack.c.bf16 %v770_v13, %v769_v17  ;;  %v1277_v9 = vpop.f32.mrb[8].mxu0 }
 0x2ae   : > { %v731_v24 = vadd.f32 %v1277_v9, %v1149_v22  ;;  %v722_v29 = vpop.f32.mrb[9].mxu0 }
 0x2af   : > { %v723_v30 = vadd.f32 %v1149_v22, %v722_v29  ;;  %v1278_v32 = vpop.f32.mrb[10].mxu0  ;;  %1291 = vmatprep.mubr.msk.bf16.mxu1 %vm298_vm0, %v785_v23 }
 0x2b0   : > { %v734_v37 = vadd.f32 %v1278_v32, %v1149_v22  ;;  %v725_v38 = vpop.f32.mrb[11].mxu0  ;;  %1292 = vmatmul.mubr.msk.bf16.vlgmr.msra.gmra.mrb[28].mxu1 %vm298_vm0, %v786_v18  ;;  %v775_v28 = vmax.f32 %v731_v24, 0.0 }
 0x2b1   : > { %v726_v20 = vadd.f32 %v1149_v22, %v725_v38  ;;  %v773_v16 = vmax.f32 %v723_v30, 0.0 }
 0x2b2   : > { %v776_v39 = vmax.f32 %v734_v37, 0.0 }
 0x2b3   : > { %v774_v40 = vmax.f32 %v726_v20, 0.0 }
 0x2b4   : > { %v788_v43 = vpack.c.bf16 %v776_v39, %v775_v28 }
 0x2b5   : > { %v787_v44 = vpack.c.bf16 %v774_v40, %v773_v16  ;;  %v1281_v46 = vpop.f32.mrb[12].mxu0  ;;  %v1361_v40 = vmov 0.0  }
 0x2b6   : > { %v747_v41 = vadd.f32 %v1281_v46, %v1149_v22  ;;  %v738_v26 = vpop.f32.mrb[13].mxu0  ;;  %1307 = vmatprep.subr.bf16.mxu0 %v1361_v40  ;;  %1323 = vmatprep.mubr.msk.bf16.mxu0 %vm1362_vm1, %v1361_v40 }
 0x2b7   : > { %v739_v58 = vadd.f32 %v1149_v22, %v738_v26  ;;  %v1282_v59 = vpop.f32.mrb[14].mxu0  ;;  %1295 = vmatprep.mubr.msk.bf16.mxu1 %vm298_vm0, %v787_v44 }
 0x2b8   : > { %v779_v5 = vmax.f32 %v747_v41, 0.0  ;;  %v750_v4 = vadd.f32 %v1282_v59, %v1149_v22  ;;  %v741_v7 = vpop.f32.mrb[15].mxu0  ;;  %1296 = vmatmul.mubr.msk.bf16.gmra.mrb[32].mxu1 %vm298_vm0, %v788_v43  ;;  %v1662_v43 = vld [vmem:[%s1743_s4 + $0x1] ss:$0 sm:$0xff] }
 0x2b9   : > { %v777_v60 = vmax.f32 %v739_v58, 0.0  ;;  %v742_v62 = vadd.f32 %v1149_v22, %v741_v7 }
 0x2ba   : > { %v780_v63 = vmax.f32 %v750_v4, 0.0 }
 0x2bb   : > { %v778_v1 = vmax.f32 %v742_v62, 0.0 }
 0x2bc   : > { %v790_v15 = vpack.c.bf16 %v780_v63, %v779_v5 }
 0x2bd   : > { %v789_v17 = vpack.c.bf16 %v778_v1, %v777_v60  ;;  %v1285_v13 = vpop.f32.mrb[16].mxu0 }
 0x2be   : > { %v763_v18 = vadd.f32 %v1285_v13, %v1149_v22  ;;  %v754_v23 = vpop.f32.mrb[17].mxu0 }
 0x2bf   : > { %v755_v9 = vadd.f32 %v1149_v22, %v754_v23  ;;  %v1286_v24 = vpop.f32.mrb[18].mxu0  ;;  %1299 = vmatprep.mubr.msk.bf16.mxu1 %vm298_vm0, %v789_v17 }
 0x2c0   : > { %v783_v29 = vmax.f32 %v763_v18, 0.0  ;;  %v766_v30 = vadd.f32 %v1286_v24, %v1149_v22  ;;  %v757_v32 = vpop.f32.mrb[19].mxu0  ;;  %1300 = vmatmul.mubr.msk.bf16.gmra.mrb[36].mxu1 %vm298_vm0, %v790_v15 }
 0x2c1   : > { %v781_v37 = vmax.f32 %v755_v9, 0.0  ;;  %v758_v38 = vadd.f32 %v1149_v22, %v757_v32 }
 0x2c2   : > { %v784_v20 = vmax.f32 %v766_v30, 0.0 }
 0x2c3   : > { %v782_v28 = vmax.f32 %v758_v38, 0.0 }
 0x2c4   : > { %v792_v39 = vpack.c.bf16 %v784_v20, %v783_v29 }
 0x2c5   : > { %v791_v16 = vpack.c.bf16 %v782_v28, %v781_v37 }
 0x2c7   : > { %1303 = vmatprep.mubr.msk.bf16.mxu1 %vm298_vm0, %v791_v16 }
 0x2c8   : > { %1304 = vmatmul.mubr.msk.bf16.gmra.mrb[40].mxu1 %vm298_vm0, %v792_v39 }
 0x383   : > { %v1293_v22 = vpop.f32.mrb[28].mxu1 }
 0x384   : > { %v882_v44 = vadd.f32 %v1293_v22, %v1662_v43  ;;  %v873_v46 = vpop.f32.mrb[29].mxu1 }
 0x385   : > { %v874_v41 = vadd.f32 %v1662_v43, %v873_v46  ;;  %v1294_v26 = vpop.f32.mrb[30].mxu1 }
 0x386   : > { %v938_v58 = vadd.f32 %v882_v44, %v604_v3  ;;  %v885_v59 = vadd.f32 %v1294_v26, %v1662_v43  ;;  %v876_v5 = vpop.f32.mrb[31].mxu1 }
 0x387   : > { %v936_v4 = vadd.f32 %v874_v41, %v602_v55  ;;  %v877_v7 = vadd.f32 %v1662_v43, %v876_v5 }
 0x388   : > { %v939_v60 = vadd.f32 %v885_v59, %v605_v54  ;;  %v954_v63 = vmax.f32 %v938_v58, 0.0 }
 0x389   : > { %v937_v62 = vadd.f32 %v877_v7, %v603_v56  ;;  %v952_v15 = vmax.f32 %v936_v4, 0.0 }
 0x38a   : > { %v955_v1 = vmax.f32 %v939_v60, 0.0 }
 0x38b   : > { %v953_v17 = vmax.f32 %v937_v62, 0.0  ;;  %v1297_v51 = vpop.f32.mrb[32].mxu1 }
 0x38c   : > { %v970_v3 = vpack.c.bf16 %v955_v1, %v954_v63  ;;  %v898_v13 = vadd.f32 %v1297_v51, %v1662_v43  ;;  %v889_v18 = vpop.f32.mrb[33].mxu1 }
 0x38d   : > { %v969_v23 = vpack.c.bf16 %v953_v17, %v952_v15  ;;  %v890_v49 = vadd.f32 %v1662_v43, %v889_v18  ;;  %v1298_v55 = vpop.f32.mrb[34].mxu1 }
 0x38e   : > { %v942_v52 = vadd.f32 %v898_v13, %v608_v2  ;;  %v901_v54 = vadd.f32 %v1298_v55, %v1662_v43  ;;  %v892_v53 = vpop.f32.mrb[35].mxu1  ;;  %v984_v44 = vsel %vm298_vm0, %v970_v3, 0 }
 0x38f   : > { %v940_v56 = vadd.f32 %v890_v49, %v606_v12  ;;  %v893_v9 = vadd.f32 %v1662_v43, %v892_v53  ;;  %v981_v24 = vsel %vm298_vm0, %v969_v23, 0 }
 0x390   : > { %v943_v29 = vadd.f32 %v901_v54, %v609_v11  ;;  %1308 = vmatpush3.bf16.xpose.msra.mxu0 %v981_v24  ;;  %v958_v61 = vmax.f32 %v942_v52, 0.0 }
 0x391   : > { %v941_v30 = vadd.f32 %v893_v9, %v607_v8  ;;  %1309 = vmatprep.subr.bf16.mxu0 %v1361_v40  ;;  %v956_v32 = vmax.f32 %v940_v56, 0.0 }
 0x392   : > { %v959_v2 = vmax.f32 %v943_v29, 0.0 }
 0x393   : > { %v957_v37 = vmax.f32 %v941_v30, 0.0  ;;  %v1301_v38 = vpop.f32.mrb[36].mxu1 }
 0x394   : > { %v972_v0 = vpack.c.bf16 %v959_v2, %v958_v61  ;;  %v914_v12 = vadd.f32 %v1301_v38, %v1662_v43  ;;  %v905_v20 = vpop.f32.mrb[37].mxu1 }
 0x395   : > { %v971_v28 = vpack.c.bf16 %v957_v37, %v956_v32  ;;  %v906_v39 = vadd.f32 %v1662_v43, %v905_v20  ;;  %v1302_v6 = vpop.f32.mrb[38].mxu1 }
 0x396   : > { %v946_v11 = vadd.f32 %v914_v12, %v612_v33  ;;  %v917_v10 = vadd.f32 %v1302_v6, %v1662_v43  ;;  %v908_v8 = vpop.f32.mrb[39].mxu1 }
 0x397   : > { %v944_v16 = vadd.f32 %v906_v39, %v610_v19  ;;  %v909_v22 = vadd.f32 %v1662_v43, %v908_v8  ;;  %v987_v63 = vsel %vm298_vm0, %v971_v28, 0 }
 0x398   : > { %v947_v46 = vadd.f32 %v917_v10, %v613_v36  ;;  %1310 = vmatpush3.bf16.xpose.msra.mxu0 %v984_v44  ;;  %v962_v27 = vmax.f32 %v946_v11, 0.0 }
 0x399   : > { %v945_v41 = vadd.f32 %v909_v22, %v611_v14  ;;  %1311 = vmatprep.subr.bf16.mxu0 %v1361_v40  ;;  %v960_v26 = vmax.f32 %v944_v16, 0.0 }
 0x39a   : > { %v963_v33 = vmax.f32 %v947_v46, 0.0 }
 0x39b   : > { %v961_v58 = vmax.f32 %v945_v41, 0.0  ;;  %v1305_v59 = vpop.f32.mrb[40].mxu1 }
 0x39c   : > { %v974_v31 = vpack.c.bf16 %v963_v33, %v962_v27  ;;  %v930_v19 = vadd.f32 %v1305_v59, %v1662_v43  ;;  %v921_v5 = vpop.f32.mrb[41].mxu1 }
 0x39d   : > { %v973_v4 = vpack.c.bf16 %v961_v58, %v960_v26  ;;  %v922_v7 = vadd.f32 %v1662_v43, %v921_v5  ;;  %v1306_v34 = vpop.f32.mrb[42].mxu1 }
 0x39e   : > { %v950_v36 = vadd.f32 %v930_v19, %v616_v47  ;;  %v933_v35 = vadd.f32 %v1306_v34, %v1662_v43  ;;  %v924_v14 = vpop.f32.mrb[43].mxu1  ;;  %v996_v50 = vsel %vm298_vm0, %v974_v31, 0 }
 0x39f   : > { %v948_v60 = vadd.f32 %v922_v7, %v614_v25  ;;  %v925_v62 = vadd.f32 %v1662_v43, %v924_v14  ;;  %v990_v25 = vsel %vm298_vm0, %v972_v0, 0  ;;  %v993_v48 = vsel %vm298_vm0, %v973_v4, 0  ;;  %v968_v43 = vld [vmem:[%s1744_s5] sm:$0xf] }
 0x3a0   : > { %v951_v1 = vadd.f32 %v933_v35, %v617_v57  ;;  %1312 = vmatpush3.bf16.xpose.msra.mxu0 %v987_v63  ;;  %v966_v42 = vmax.f32 %v950_v36, 0.0 }
 0x3a1   : > { %v949_v15 = vadd.f32 %v925_v62, %v615_v21  ;;  %1313 = vmatprep.subr.bf16.mxu0 %v1361_v40  ;;  %v964_v17 = vmax.f32 %v948_v60, 0.0 }
 0x3a2   : > { %v967_v47 = vmax.f32 %v951_v1, 0.0 }
 0x3a3   : > { %v965_v51 = vmax.f32 %v949_v15, 0.0 }
 0x3a4   : > { %v976_v3 = vpack.c.bf16 %v967_v47, %v966_v42 }
 0x3a5   : > { %v975_v45 = vpack.c.bf16 %v965_v51, %v964_v17 }
 0x3a6   : > { %v1002_v21 = vsel %vm298_vm0, %v976_v3, 0 }
 0x3a7   : > { %v999_v57 = vsel %vm298_vm0, %v975_v45, 0 }
 0x3a8   : > { %1314 = vmatpush3.bf16.xpose.msra.mxu0 %v990_v25 }
 0x3a9   : > { %1315 = vmatprep.subr.bf16.mxu0 %v1361_v40 }
 0x3b0   : > { %1316 = vmatpush3.bf16.xpose.msra.mxu0 %v993_v48 }
 0x3b1   : > { %1317 = vmatprep.subr.bf16.mxu0 %v1361_v40 }
 0x3b8   : > { %1318 = vmatpush3.bf16.xpose.msra.mxu0 %v996_v50 }
 0x3b9   : > { %1319 = vmatprep.subr.bf16.mxu0 %v1361_v40 }
 0x3c0   : > { %1320 = vmatpush3.bf16.xpose.msra.mxu0 %v999_v57 }
 0x3c1   : > { %1321 = vmatprep.subr.bf16.mxu0 %v1361_v40 }
 0x3c8   : > { %1322 = vmatpush3.bf16.xpose.msra.mxu0 %v1002_v21 }
 0x3cf   : > { %1324 = vmatmul.mubr.msk.bf16.vlgmr.msra.gmra.mrb[20].mxu0 %vm298_vm0, %v968_v43 }
 0x4a2   : > { %v1038_v13 = vpop.f32.mrb[20].mxu0 }
 0x4a3   : > { %v1044_v18 = vrot.slane %v1038_v13, 4  ;;  %v1325_v23 = vpop.f32.mrb[21].mxu0 }
 0x4a4   : > { %v1041_v49 = vpop.f32.mrb[22].mxu0 }
 0x4a5   : > { %v1045_v55 = vmax.f32 %v1038_v13, %v1044_v18  ;;  %v1326_v52 = vpop.f32.mrb[23].mxu0 }
 0x4a7   : > { %v1046_v54 = vrot.slane %v1045_v55, 2 }
 0x4a9   : > { %v1047_v53 = vmax.f32 %v1045_v55, %v1046_v54 }
 0x4ab   : > { %v1048_v40 = vrot.slane %v1047_v53, 1 }
 0x4ad   : > { %v1049_v56 = vmax.f32 %v1047_v53, %v1048_v40 }
 0x4af   : > { %v1050_v9 = vsub.f32 %v1038_v13, %v1049_v56 }
 0x4b1   : > { %v1051_v24 = vmul.f32 1.442695, %v1050_v9 }
 0x4b3   : > { %1349 = vpow2.f32 %v1051_v24 }
 0x4bd   : > { %v1350_v29 = vpop.eup %1349 }
 0x4be   : > { %v1053_v30 = vrot.slane %v1350_v29, 4 }
 0x4c0   : > { %v1054_v61 = vadd.f32 %v1350_v29, %v1053_v30 }
 0x4c2   : > { %v1055_v2 = vrot.slane %v1054_v61, 2 }
 0x4c4   : > { %v1056_v32 = vadd.f32 %v1055_v2, %v1054_v61 }
 0x4c6   : > { %v1057_v37 = vrot.slane %v1056_v32, 1 }
 0x4c8   : > { %v1058_v38 = vadd.f32 %v1057_v37, %v1056_v32 }
 0x4ca   : > { %1351 = vrcp.f32 %v1058_v38 }
 0x4d4   : > { %v1352_v0 = vpop.eup %1351 }
 0x4d5   : > { %v1060_v12 = vmul.f32 %v1352_v0, %v1350_v29 }
 0x4d7   : > { %1061 = vst [vmem:[%s251_s11] sm:$0xff] %v1060_v12 }
 0x4d8 PF: > { %s16_s21 = sadd.s32 1, %s1359_s21  }
 0x4d9   : > { %p13_p5 = scmp.ge.s32.totalorder %s16_s21, 4  }
 0x4db   :  { %15 = sbr.rel (!%p13_p5) target bundleno = 1 (0x1), region = 76 }

</bundles_post_ra>
